<compile_context>
chip_gen: v7x
topology: tpu7x:2x2x1
jax: 0.10.0
libtpu: 0.0.40
codegen_flags: <defaults>
</compile_context>

<pallas_src>
import functools

import jax
import jax.numpy as jnp
from jax.experimental import pallas as pl
from jax.experimental.pallas import tpu as pltpu


def _vmem_budget_bytes():
    """~78% of physical VMEM (leaves Mosaic headroom on every generation).

    v7x (64 MiB)     -> ~50 MiB cap.
    v5e/v6e (128 MiB) -> ~100 MiB cap.
    """
    phys = 64 * 1024 * 1024  # conservative default (v7x-sized)
    try:
        info = pltpu.get_tpu_info()
        for attr in ("vmem_capacity_bytes", "vmem_size_bytes", "vmem_bytes"):
            val = getattr(info, attr, None)
            if val:
                phys = int(val)
                break
    except Exception:
        pass
    return int(phys * 0.78)


def _vmem_footprint_bytes(B, D, tc, w_itemsize, x_itemsize):
    return (2 * D * tc * w_itemsize      # W tile, double-buffered
            + 2 * B * tc * 4             # out tile, double-buffered
            + 2 * B * D * x_itemsize     # resident x (counted x2, conservative)
            + D * tc * 4                 # f32 temp for the column sq-norm
            + 3 * B * tc * 4             # costh / scale / margin f32 temps
            + (2 << 20))                 # misc headroom


def _choose_tile_classes(B, D, C, w_itemsize, x_itemsize, vmem_budget):
    """Class-tile width adaptive to D and to the generation's VMEM budget."""
    tile_target = 8 * (1 << 20) if vmem_budget >= 80 * (1 << 20) else 4 * (1 << 20)
    tc = (tile_target // max(1, D * w_itemsize)) // 256 * 256
    tc = max(256, min(tc, 4096))
    while tc > 256 and _vmem_footprint_bytes(B, D, tc, w_itemsize, x_itemsize) > vmem_budget:
        tc -= 256
    if C <= tc:
        tc = C  # single full-width tile (block dim == array dim is always legal)
    return tc


def _amsoftmax_kernel(x_ref, rs_ref, lb_ref, w_ref, o_ref, *,
                      sm, tc, num_classes, ragged):
    j = pl.program_id(0)                      # class-tile index

    w = w_ref[...]                            # (D, TC), raw storage dtype
    # Reciprocal column L2 norm in f32. clamp(sum_sq, 1e-24) == clamp(norm, 1e-12).
    col_ss = jnp.sum(jnp.square(w.astype(jnp.float32)), axis=0, keepdims=True)
    col_inv = jax.lax.rsqrt(jnp.maximum(col_ss, jnp.float32(1e-24)))     # (1, TC)

    # Un-normalized matmul on the MXU (raw operands, f32 accumulation). Both
    # normalizations plus the scale s are applied to the f32 result instead.
    costh = jnp.dot(x_ref[...], w, preferred_element_type=jnp.float32)   # (B, TC)

    col_ids = j * tc + jax.lax.broadcasted_iota(jnp.int32, costh.shape, 1)
    margin = jnp.where(col_ids == lb_ref[...], jnp.float32(sm), jnp.float32(0.0))
    out = costh * (rs_ref[...] * col_inv) - margin
    if ragged:
        # Ragged last tile: its out-of-bounds input columns are uninitialized,
        # so zero anything derived from them (those stores are masked anyway).
        out = jnp.where(col_ids < num_classes, out, jnp.float32(0.0))
    o_ref[...] = out.astype(o_ref.dtype)


def am_softmax_forward(x, W, lb, *, s=30.0, m=0.3, use_bf16_matmul=False,
                       tile_classes=None):
    """AM-Softmax forward: returns costh_m_s of shape (B, C), float32."""
    B, D = x.shape
    D2, C = W.shape
    assert D == D2 and lb.shape[0] == B

    # Row-norm reciprocal (scale s folded in), computed ONCE instead of per
    # class-tile: O(B*D), tiny next to the O(D*C) W stream the kernel is bound by.
    x32 = x.astype(jnp.float32)
    row_scale = jnp.float32(s) * jax.lax.rsqrt(
        jnp.maximum(jnp.sum(x32 * x32, axis=1, keepdims=True), jnp.float32(1e-24)))
    lb2 = lb.astype(jnp.int32).reshape(B, 1)

    # x is cast once (never per tile); W streams in its storage dtype (f32/bf16).
    x_in = x.astype(jnp.bfloat16) if use_bf16_matmul else x32
    # TODO(synk): optional fp8 (v7x) / int8 (v5e/v6e) W storage with the
    # per-column dequant scale folded into col_inv would halve the W stream again.

    w_itemsize = jnp.dtype(W.dtype).itemsize
    x_itemsize = jnp.dtype(x_in.dtype).itemsize
    vmem_budget = _vmem_budget_bytes()
    if tile_classes is None:
        TC = _choose_tile_classes(B, D, C, w_itemsize, x_itemsize, vmem_budget)
    else:
        TC = int(tile_classes)
    n_tiles = int(pl.cdiv(C, TC))
    ragged = (n_tiles * TC != C)
    # TODO(synk): for very large B, add an inner grid axis over the batch (C
    # stays outermost so W is still streamed over HBM exactly once).

    vmem_limit = int(min(max(_vmem_footprint_bytes(B, D, TC, w_itemsize, x_itemsize),
                             32 * 1024 * 1024), vmem_budget))

    cost = pl.CostEstimate(
        flops=2 * B * D * C + 3 * D * C + 4 * B * C,
        transcendentals=C,
        bytes_accessed=int(x_in.size * x_itemsize + W.size * w_itemsize
                           + B * C * 4 + B * 8),
    )

    kernel = functools.partial(_amsoftmax_kernel, sm=float(s) * float(m),
                               tc=TC, num_classes=C, ragged=ragged)

    out = pl.pallas_call(
        kernel,
        out_shape=jax.ShapeDtypeStruct((B, C), jnp.float32),
        grid=(n_tiles,),
        in_specs=[
            pl.BlockSpec((B, D), lambda j: (0, 0)),   # x: resident
            pl.BlockSpec((B, 1), lambda j: (0, 0)),   # s / ||x||: resident
            pl.BlockSpec((B, 1), lambda j: (0, 0)),   # labels: resident
            pl.BlockSpec((D, TC), lambda j: (0, j)),  # W: streamed over C
        ],
        out_specs=pl.BlockSpec((B, TC), lambda j: (0, j)),
        compiler_params=pltpu.CompilerParams(
            dimension_semantics=("parallel",),
            vmem_limit_bytes=vmem_limit),
        cost_estimate=cost,
    )(x_in, row_scale, lb2, W)
    return out


def xavier_normal(key, in_features, out_features, gain=1.0):
    # matches nn.init.xavier_normal_(W, gain=1) on (in_features, out_features)
    std = gain * (2.0 / (in_features + out_features)) ** 0.5
    return std * jax.random.normal(key, (in_features, out_features),
                                   dtype=jnp.float32)


def reference_forward(x, W, lb, s=30.0, m=0.3):
    xn = x / jnp.maximum(jnp.linalg.norm(x, axis=1, keepdims=True), 1e-12)
    wn = W / jnp.maximum(jnp.linalg.norm(W, axis=0, keepdims=True), 1e-12)
    costh = xn @ wn
    delt = jax.nn.one_hot(lb, W.shape[1], dtype=jnp.float32) * m
    return s * (costh - delt)


if __name__ == "__main__":
    key = jax.random.PRNGKey(0)
    k_x, k_w, k_lb, k_x2, k_w2, k_lb2 = jax.random.split(key, 6)

    # --- small shapes matching the module's forward: x (B, in), lb (B,) -------
    batch, in_features, out_features = 8, 32, 16
    x = jax.random.normal(k_x, (batch, in_features), dtype=jnp.float32)
    W = xavier_normal(k_w, in_features, out_features, gain=1.0)
    lb = jax.random.randint(k_lb, (batch,), 0, out_features, dtype=jnp.int32)

    ref = reference_forward(x, W, lb, s=30.0, m=0.3)

    # Full-f32 path: matches the torch reference tightly.
    out_f32 = jax.block_until_ready(
        am_softmax_forward(x, W, lb, s=30.0, m=0.3, use_bf16_matmul=False))
    assert out_f32.shape == (batch, out_features)
    assert jnp.allclose(out_f32, ref, atol=1e-3, rtol=1e-3), "f32 mismatch"

    # bf16-W path (half-width W HBM stream, fast MXU path, f32 accumulation).
    out_bf16 = jax.block_until_ready(
        am_softmax_forward(x, W.astype(jnp.bfloat16), lb,
                           s=30.0, m=0.3, use_bf16_matmul=True))
    assert out_bf16.shape == (batch, out_features)
    assert jnp.allclose(out_bf16, ref, atol=3e-1, rtol=2e-2), "bf16 mismatch"

    # Multi-tile + ragged-last-tile path (C not a multiple of the class tile).
    b2, d2, c2 = 8, 64, 300
    x2 = jax.random.normal(k_x2, (b2, d2), dtype=jnp.float32)
    W2 = xavier_normal(k_w2, d2, c2, gain=1.0)
    lab2 = jax.random.randint(k_lb2, (b2,), 0, c2, dtype=jnp.int32)
    ref2 = reference_forward(x2, W2, lab2, s=30.0, m=0.3)
    out2 = jax.block_until_ready(
        am_softmax_forward(x2, W2, lab2, s=30.0, m=0.3,
                           use_bf16_matmul=False, tile_classes=128))
    assert out2.shape == (b2, c2)
    assert jnp.allclose(out2, ref2, atol=1e-3, rtol=1e-3), "ragged-tile mismatch"

    print("KERNEL_OK")
</pallas_src>

<mosaic_0001>
module attributes {stable_mosaic.version = 11 : i64} {
  func.func @_amsoftmax_kernel(%arg0: i32, %arg1: memref<8x32xf32, #tpu.memory_space<vmem>>, %arg2: memref<8x1xf32, #tpu.memory_space<vmem>>, %arg3: memref<8x1xi32, #tpu.memory_space<vmem>>, %arg4: memref<32x16xf32, #tpu.memory_space<vmem>>, %arg5: memref<8x16xf32, #tpu.memory_space<vmem>>) attributes {dimension_semantics = [#tpu.dimension_semantics<parallel>], iteration_bounds = array<i64: 1>, scalar_prefetch = 0 : i64, scratch_operands = 0 : i64, tpu.core_type = #tpu.core_type<tc>, window_params = [{pipeline_mode = #tpu.pipeline_mode<synchronous>, transform_indices = @transform_0, window_bounds = array<i64: 8, 32>}, {pipeline_mode = #tpu.pipeline_mode<synchronous>, transform_indices = @transform_1, window_bounds = array<i64: 8, 1>}, {pipeline_mode = #tpu.pipeline_mode<synchronous>, transform_indices = @transform_2, window_bounds = array<i64: 8, 1>}, {transform_indices = @transform_3, window_bounds = array<i64: 32, 16>}, {transform_indices = @transform_4, window_bounds = array<i64: 8, 16>}]} {
    %c0 = arith.constant 0 : index
    %c0_0 = arith.constant 0 : index
    %0 = vector.load %arg4[%c0, %c0_0] : memref<32x16xf32, #tpu.memory_space<vmem>>, vector<32x16xf32>
    %1 = arith.mulf %0, %0 : vector<32x16xf32>
    %cst = arith.constant dense<0.000000e+00> : vector<16xf32>
    %2 = vector.multi_reduction <add>, %1, %cst [0] : vector<32x16xf32> to vector<16xf32>
    %3 = vector.shape_cast %2 : vector<16xf32> to vector<1x16xf32>
    %cst_1 = arith.constant 1.000000e-24 : f32
    %4 = vector.broadcast %cst_1 : f32 to vector<1x16xf32>
    %5 = arith.maximumf %3, %4 : vector<1x16xf32>
    %6 = math.rsqrt %5 : vector<1x16xf32>
    %c0_2 = arith.constant 0 : index
    %c0_3 = arith.constant 0 : index
    %7 = vector.load %arg1[%c0_2, %c0_3] : memref<8x32xf32, #tpu.memory_space<vmem>>, vector<8x32xf32>
    %cst_4 = arith.constant dense<0.000000e+00> : vector<8x16xf32>
    %8 = tpu.matmul %7, %0, %cst_4 {dimension_numbers = #tpu.dot_dimension_numbers<[1], [0], [0], [1], [0, 0, 1, 1], [], []>} : vector<8x32xf32>, vector<32x16xf32>, vector<8x16xf32> -> vector<8x16xf32>
    %c16_i32 = arith.constant 16 : i32
    %9 = arith.muli %arg0, %c16_i32 : i32
    %10 = tpu.iota {dimensions = array<i32: 1>} : vector<8x16xi32>
    %11 = vector.broadcast %9 : i32 to vector<8x16xi32>
    %12 = arith.addi %11, %10 : vector<8x16xi32>
    %c0_5 = arith.constant 0 : index
    %c0_6 = arith.constant 0 : index
    %13 = vector.load %arg3[%c0_5, %c0_6] : memref<8x1xi32, #tpu.memory_space<vmem>>, vector<8x1xi32>
    %14 = vector.broadcast %13 : vector<8x1xi32> to vector<8x16xi32>
    %15 = arith.cmpi eq, %12, %14 : vector<8x16xi32>
    %cst_7 = arith.constant 9.000000e+00 : f32
    %cst_8 = arith.constant 0.000000e+00 : f32
    %16 = vector.broadcast %cst_7 : f32 to vector<8x16xf32>
    %17 = vector.broadcast %cst_8 : f32 to vector<8x16xf32>
    %18 = arith.select %15, %16, %17 : vector<8x16xi1>, vector<8x16xf32>
    %c0_9 = arith.constant 0 : index
    %c0_10 = arith.constant 0 : index
    %19 = vector.load %arg2[%c0_9, %c0_10] : memref<8x1xf32, #tpu.memory_space<vmem>>, vector<8x1xf32>
    %20 = vector.broadcast %19 : vector<8x1xf32> to vector<8x16xf32>
    %21 = vector.broadcast %6 : vector<1x16xf32> to vector<8x16xf32>
    %22 = arith.mulf %20, %21 : vector<8x16xf32>
    %23 = arith.mulf %8, %22 : vector<8x16xf32>
    %24 = arith.subf %23, %18 : vector<8x16xf32>
    %c0_11 = arith.constant 0 : index
    %c0_12 = arith.constant 0 : index
    %25 = vector.load %arg5[%c0_11, %c0_12] : memref<8x16xf32, #tpu.memory_space<vmem>>, vector<8x16xf32>
    tpu.vector_store %arg5[%c0_11, %c0_12], %24 {strides = array<i32>} : memref<8x16xf32, #tpu.memory_space<vmem>>, vector<8x16xf32>,
    return
  }
  func.func @transform_0(%arg0: i32) -> (i32, i32) {
    %c0_i32 = arith.constant 0 : i32
    %c0_i32_0 = arith.constant 0 : i32
    %c0_i32_1 = arith.constant 0 : i32
    return %c0_i32, %c0_i32_0 : i32, i32
  }
  func.func @transform_1(%arg0: i32) -> (i32, i32) {
    %c0_i32 = arith.constant 0 : i32
    %c0_i32_0 = arith.constant 0 : i32
    %c0_i32_1 = arith.constant 0 : i32
    return %c0_i32, %c0_i32_0 : i32, i32
  }
  func.func @transform_2(%arg0: i32) -> (i32, i32) {
    %c0_i32 = arith.constant 0 : i32
    %c0_i32_0 = arith.constant 0 : i32
    %c0_i32_1 = arith.constant 0 : i32
    return %c0_i32, %c0_i32_0 : i32, i32
  }
  func.func @transform_3(%arg0: i32) -> (i32, i32) {
    %c0_i32 = arith.constant 0 : i32
    %c0_i32_0 = arith.constant 0 : i32
    return %c0_i32, %arg0 : i32, i32
  }
  func.func @transform_4(%arg0: i32) -> (i32, i32) {
    %c0_i32 = arith.constant 0 : i32
    %c0_i32_0 = arith.constant 0 : i32
    return %c0_i32, %arg0 : i32, i32
  }
}

</mosaic_0001>

<bundles_post_ra>
// kernel: tpu_custom_call.1
= control target key start
LH: loop header
LB: loop body
LE: loop exit
PB: predicated region body
PF: predicated region fallthrough
CT: control target
= control target key end

     0   :  { %vm26_vm0 = vcmask 130048   ;;  %v207_v3 = vmov 0.0|0.0   ;;  %s275_s0 = inlined_call_operand.vmem [shape: f32[8,32], index: 0, kind: input, shape index: {}]   ;;  %s276_s1 = inlined_call_operand.vmem [shape: f32[8,1], index: 1, kind: input, shape index: {}]   ;;  %s277_s2 = inlined_call_operand.vmem [shape: s32[8,1], index: 2, kind: input, shape index: {}]   ;;  %s278_s3 = inlined_call_operand.vmem [shape: f32[32,16], index: 3, kind: input, shape index: {}]   ;;  %s279_s4 = inlined_call_operand.hbm [shape: f32[8,16], index: 4, kind: output, shape index: {}]  }
   0x1   :  { %v18_v0 = vld [vmem:[%s278_s3] sm:$0xff]  ;;  %v19_v1 = vld [vmem:[%s278_s3 + $0x8] sm:$0xff]  ;;  %v20_v2 = vld [vmem:[%s278_s3 + $0x10] sm:$0xff]  ;;  %169 = vmatprep.subr.bf16.mxu0 %v207_v3 }
   0x2   :  { %v22_v4 = vmul.f32 %v18_v0, %v18_v0  ;;  %v23_v5 = vmul.f32 %v19_v1, %v19_v1  ;;  %v170_v6 = vpack.c.bf16 %v19_v1, %v18_v0  ;;  %v21_v7 = vld [vmem:[%s278_s3 + $0x18] sm:$0xff]  ;;  %v24_v8 = vmul.f32 %v20_v2, %v20_v2  ;;  %v128_v11 = vld [vmem:[%s276_s1] sm:$0xff] }
   0x3   :  { %v25_v9 = vmul.f32 %v21_v7, %v21_v7  ;;  %v173_v10 = vpack.c.bf16 %v21_v7, %v20_v2 }
   0x4   :  { %9 = vsyncpa [#allocation3], 0  ;;  %v27_v12 = vsel %vm26_vm0, %v22_v4, 0.0  ;;  %v28_v13 = vsel %vm26_vm0, %v23_v5, 0.0  ;;  %171 = vmatpush3.bf16.msra.mxu0 %v170_v6  ;;  %v30_v14 = vsel %vm26_vm0, %v24_v8, 0.0  ;;  %vm208_vm1 = vmmov 0  }
   0x5   :  { %v209_v15 = vmov 0.0   ;;  %v29_v16 = vadd.f32 %v28_v13, %v27_v12  ;;  %172 = vmatprep.subr.bf16.mxu0 %v207_v3  ;;  %v210_v17 = vmov 0   ;;  %v32_v18 = vsel %vm26_vm0, %v25_v9, 0.0  ;;  %v122_v20 = vld [vmem:[%s277_s2] sm:$0xff] }
   0x6   :  { %166 = vmatprep.mubr.msk.f32.mxu0 %vm208_vm1, %v209_v15  ;;  %180 = vset.pattern.permute.xlu0 %v210_v17  ;;  %v42_v21 = vld [vmem:[%s275_s0] sm:$0xff]  ;;  %vm43_vm2 = vcmask 261120   ;;  %v118_v31 = vlaneseq  ;;  %s211_s0 = smov [#allocation2]  }
   0x7   :  { %131 = vperm.xlu0 %180, %v128_v11   ;;  %v31_v19 = vadd.f32 %v30_v14, %v29_v16  ;;  %s144_s2 = sshll.u32 %s211_s0, 4  ;;  %s145_s2 = int_to_ptr.vmem [resolvable:$true] %s144_s2 }
   0x8   :  { %174 = vmatpush3.bf16.msra.mxu0 %v173_v10  ;;  %v119_v32 = vand.u32 127, %v118_v31  ;;  %s183_s27 = scalar_lea.vmem %s145_s2, 128  ;;  %p188_p1 = scmp.lt.s32.totalorder %s145_s2, %s145_s2 }
   0x9   :  { %v33_v22 = vadd.f32 %v32_v18, %v31_v19  ;;  %p184_p0 = scmp.ne.s32.totalorder %s145_s2, %s183_s27  ;;  %p189_p2 = scmp.lt.s32.totalorder %s183_s27, %s183_s27 }
   0xb   :  { %124 = vperm.xlu0 %180, %v122_v20   ;;  %167 = vmatmul.mubr.msk.f32.vlgmr.msra.gmra.mrb[0].mxu0 %vm43_vm2, %v42_v21  ;;  %v34_v23 = vrot.slane %v33_v22, 4  ;;  %p190_p3 = por %p189_p2, %p188_p1 }
   0xd   :  { %v35_v24 = vadd.f32 %v34_v23, %v33_v22  ;;  %p191_p4 = pnand %p190_p3, %p184_p0 }
   0xf   :  { %v36_v25 = vrot.slane %v35_v24, 2 }
  0x11   :  { %v37_v26 = vadd.f32 %v36_v25, %v35_v24 }
  0x13   :  { %v38_v27 = vrot.slane %v37_v26, 1 }
  0x15   :  { %v39_v28 = vadd.f32 %v38_v27, %v37_v26 }
  0x17   :  { %v40_v29 = vmax.f32 %v39_v28, 1e-24 }
  0x19   :  { %181 = vrsqrt.f32 %v40_v29 }
  0x23   :  { %v182_v33 = vpop.eup %181 }
  0x86   :  { %v132_v30 = vpop.permute.xlu0 %131 }
  0x87   :  { %v134_v35 = vmul.f32 %v182_v33, %v132_v30 }
  0x8a   :  { %v125_v34 = vpop.permute.xlu0 %124 }
  0x8b   :  { %vm126_vm3 = vcmp.eq.s32.totalorder %v119_v32, %v125_v34 }
  0x8c   :  { %v127_v39 = vsel %vm126_vm3, 9.0, %v209_v15 }
  0xde   :  { %v113_v36 = vpop.f32.mrb[0].mxu0 }
  0xdf   :  { %v135_v37 = vmul.f32 %v134_v35, %v113_v36  ;;  %v168_v38 = vpop.f32.mrb[1].mxu0 }
  0xe1   :  { %v136_v40 = vsub.f32 %v135_v37, %v127_v39 }
  0xe3   :  { %137 = vst.msk [vmem:[#allocation2] sm:$0xff] %vm26_vm0, %v136_v40 }
  0xe4   :  { %194 = shalt.err (!%p191_p4)
}
  0xe5   :  { %s195_s30 = scalar_lea.hbm %s279_s4, 128 }
  0xe6   :  { %p196_p5 = scmp.ne.s32.totalorder %s279_s4, %s195_s30  ;;  %p199_p6 = scmp.lt.u32.totalorder %s195_s30, %s279_s4 }
  0xe8   :  { %p201_p7 = pnand %p199_p6, %p196_p5 }
  0xea   :  { %204 = shalt.err (!%p201_p7)
}
  0xeb   :  { %147 = dma.vmem_to_hbm [thread:$0]  %s145_s2, 128, %s279_s4, [#allocation3]  }
  0xec   :  { %205 = dma.done.wait [#allocation3], 128  }
  0xed   :  { %206 = vsyncadd [#allocation3], 4294967168 }
  0xee   :  { %151 = vsyncpa [#allocation3], 1 }

</bundles_post_ra>
